<compile_context>
chip_gen: v5e
topology: v5e:2x2
jax: 0.10.0
libtpu: 0.0.40
codegen_flags: <defaults>
</compile_context>

<pallas_src>
import functools

import jax
import jax.numpy as jnp
from jax import lax
from jax.experimental import pallas as pl
from jax.experimental.pallas import tpu as pltpu

# Sizes taken from tuning_D[...]['layers'] == [128, 256]
HIDDEN1 = 128
HIDDEN2 = 256


def _discriminator_kernel(x_ref, w1_ref, b1_ref, w2_ref, b2_ref, w3_ref, b3_ref, o_ref):
    """One batch tile of the full MLP forward pass.

    x_ref : (TB, C)    bf16 input tile (streamed)
    w1_ref: (C, 128)   bf16   b1_ref: (1, 128) f32
    w2_ref: (128, 256) bf16   b2_ref: (1, 256) f32
    w3_ref: (1, 256)   f32 (output weights as a lane-dense row)
    b3_ref: (1, 1)     f32 scalar in SMEM
    o_ref : (1, TB)    f32 lane-dense sigmoid output row
    """
    # Layer 1: Linear(C, 128) + Tanh   (Dropout is identity at inference)
    h1 = jnp.dot(x_ref[...], w1_ref[...], preferred_element_type=jnp.float32) + b1_ref[...]
    h1 = jnp.tanh(h1)

    # Layer 2: Linear(128, 256) + Tanh (Dropout is identity at inference)
    h2 = jnp.dot(h1.astype(jnp.bfloat16), w2_ref[...],
                 preferred_element_type=jnp.float32) + b2_ref[...]
    h2 = jnp.tanh(h2)

    # Output layer: Linear(256, 1) + Sigmoid, computed as w3_row . h2^T so the result is
    # already a lane-dense (1, TB) row (tiny contraction; keeps the output store unmasked).
    logit = lax.dot_general(
        w3_ref[...], h2,
        dimension_numbers=(((1,), (1,)), ((), ())),
        preferred_element_type=jnp.float32)
    o_ref[...] = jax.nn.sigmoid(logit + b3_ref[0, 0]).astype(o_ref.dtype)


def _round_up(n, m):
    return ((n + m - 1) // m) * m


@functools.partial(jax.jit, static_argnames=("tile_b",))
def discriminator_forward(x, params, tile_b=256):
    """x: (B, commit_shape) float32.  Returns (B, 1) float32 sigmoid probabilities."""
    w1, b1, w2, b2, w3, b3 = params
    B, C = x.shape

    # Effective batch tile: multiple of 128, no larger than the (padded) batch.
    tile_b = _round_up(int(tile_b), 128)
    tb = max(128, min(tile_b, _round_up(B, 128)))
    # Prefer >= 2 grid steps so dimension_semantics=("parallel",) can split work across
    # the two v7x TensorCores (harmless on v5e/v6e: weights stay resident either way).
    if tb > 128 and _round_up(B, tb) // tb < 2:
        tb = max(128, _round_up((B + 1) // 2, 128))

    padded_B = _round_up(B, tb)
    if padded_B != B:
        x = jnp.pad(x, ((0, padded_B - B), (0, 0)))
    grid = (padded_B // tb,)

    # bf16 MXU operands (f32 accumulation happens in-kernel); bf16 x also halves the only
    # streamed HBM->VMEM input. Biases and the tiny output layer stay f32.
    x_bf = x.astype(jnp.bfloat16)
    w1_bf = w1.astype(jnp.bfloat16)
    w2_bf = w2.astype(jnp.bfloat16)
    w3_row = w3.reshape(1, HIDDEN2).astype(jnp.float32)
    b3_s = b3.reshape(1, 1).astype(jnp.float32)

    out = pl.pallas_call(
        _discriminator_kernel,
        out_shape=jax.ShapeDtypeStruct((1, padded_B), jnp.float32),
        grid_spec=pltpu.PrefetchScalarGridSpec(
            num_scalar_prefetch=0,
            grid=grid,
            in_specs=[
                pl.BlockSpec((tb, C), lambda i: (i, 0)),              # x tile (streamed)
                pl.BlockSpec((C, HIDDEN1), lambda i: (0, 0)),         # w1 (resident)
                pl.BlockSpec((1, HIDDEN1), lambda i: (0, 0)),         # b1
                pl.BlockSpec((HIDDEN1, HIDDEN2), lambda i: (0, 0)),   # w2 (resident)
                pl.BlockSpec((1, HIDDEN2), lambda i: (0, 0)),         # b2
                pl.BlockSpec((1, HIDDEN2), lambda i: (0, 0)),         # w3 as a row
                pl.BlockSpec(memory_space=pltpu.MemorySpace.SMEM),    # b3 scalar
            ],
            out_specs=pl.BlockSpec((1, tb), lambda i: (0, i)),        # lane-dense row
        ),
        compiler_params=pltpu.CompilerParams(
            dimension_semantics=("parallel",)
        ),
    )(x_bf, w1_bf, b1, w2_bf, b2, w3_row, b3_s)

    return out.reshape(padded_B, 1)[:B]


def init_params(key, commit_shape):
    """Deterministic init mimicking PyTorch Linear default (U[-1/sqrt(fan_in), 1/sqrt(fan_in)])."""
    def linear(key, fan_in, fan_out):
        kw, kb = jax.random.split(key)
        bound = 1.0 / jnp.sqrt(fan_in)
        w = jax.random.uniform(kw, (fan_in, fan_out), jnp.float32, -bound, bound)
        b = jax.random.uniform(kb, (1, fan_out), jnp.float32, -bound, bound)
        return w, b

    k1, k2, k3 = jax.random.split(key, 3)
    w1, b1 = linear(k1, commit_shape, HIDDEN1)
    w2, b2 = linear(k2, HIDDEN1, HIDDEN2)
    w3, b3 = linear(k3, HIDDEN2, 1)
    return (w1, b1, w2, b2, w3, b3)


def reference_forward(x, params):
    """Pure-JAX f32 reference of the PyTorch Sequential (eval mode)."""
    w1, b1, w2, b2, w3, b3 = params
    h1 = jnp.tanh(x @ w1 + b1)
    h2 = jnp.tanh(h1 @ w2 + b2)
    return jax.nn.sigmoid(h2 @ w3 + b3)


if __name__ == "__main__":
    key = jax.random.PRNGKey(0)
    kx, kp = jax.random.split(key)

    batch = 30           # matches tuning_D batch_size; exercises the ragged-batch padding path
    commit_shape = 16    # number of columns in the data

    x = jax.random.normal(kx, (batch, commit_shape), dtype=jnp.float32)
    params = init_params(kp, commit_shape)

    out = discriminator_forward(x, params)
    out = jax.block_until_ready(out)

    ref = reference_forward(x, params)
    assert out.shape == (batch, 1)
    # bf16 MXU operands (f32 accumulation) -> looser tolerance than the pure-f32 version.
    assert jnp.allclose(out, ref, atol=2e-2, rtol=2e-2), "mismatch vs pure-JAX reference"

    print("KERNEL_OK")
</pallas_src>

<mosaic_0001>
module attributes {stable_mosaic.version = 11 : i64} {
  func.func @_discriminator_kernel(%arg0: i32, %arg1: memref<128x16xbf16, #tpu.memory_space<vmem>>, %arg2: memref<16x128xbf16, #tpu.memory_space<vmem>>, %arg3: memref<1x128xf32, #tpu.memory_space<vmem>>, %arg4: memref<128x256xbf16, #tpu.memory_space<vmem>>, %arg5: memref<1x256xf32, #tpu.memory_space<vmem>>, %arg6: memref<1x256xf32, #tpu.memory_space<vmem>>, %arg7: memref<1x1xf32, #tpu.memory_space<smem>>, %arg8: memref<1x128xf32, #tpu.memory_space<vmem>>) attributes {dimension_semantics = [#tpu.dimension_semantics<parallel>], iteration_bounds = array<i64: 1>, scalar_prefetch = 0 : i64, scratch_operands = 0 : i64, tpu.core_type = #tpu.core_type<tc>, window_params = [{transform_indices = @transform_0, window_bounds = array<i64: 128, 16>}, {pipeline_mode = #tpu.pipeline_mode<synchronous>, transform_indices = @transform_1, window_bounds = array<i64: 16, 128>}, {pipeline_mode = #tpu.pipeline_mode<synchronous>, transform_indices = @transform_2, window_bounds = array<i64: 1, 128>}, {pipeline_mode = #tpu.pipeline_mode<synchronous>, transform_indices = @transform_3, window_bounds = array<i64: 128, 256>}, {pipeline_mode = #tpu.pipeline_mode<synchronous>, transform_indices = @transform_4, window_bounds = array<i64: 1, 256>}, {pipeline_mode = #tpu.pipeline_mode<synchronous>, transform_indices = @transform_5, window_bounds = array<i64: 1, 256>}, {transform_indices = @transform_6, window_bounds = array<i64: 1, 1>}, {transform_indices = @transform_7, window_bounds = array<i64: 1, 128>}]} {
    %c0 = arith.constant 0 : index
    %c0_0 = arith.constant 0 : index
    %0 = vector.load %arg1[%c0, %c0_0] : memref<128x16xbf16, #tpu.memory_space<vmem>>, vector<128x16xbf16>
    %c0_1 = arith.constant 0 : index
    %c0_2 = arith.constant 0 : index
    %1 = vector.load %arg2[%c0_1, %c0_2] : memref<16x128xbf16, #tpu.memory_space<vmem>>, vector<16x128xbf16>
    %cst = arith.constant dense<0.000000e+00> : vector<128x128xf32>
    %2 = tpu.matmul %0, %1, %cst {dimension_numbers = #tpu.dot_dimension_numbers<[1], [0], [0], [1], [0, 0, 1, 1], [], []>} : vector<128x16xbf16>, vector<16x128xbf16>, vector<128x128xf32> -> vector<128x128xf32>
    %c0_3 = arith.constant 0 : index
    %c0_4 = arith.constant 0 : index
    %3 = vector.load %arg3[%c0_3, %c0_4] : memref<1x128xf32, #tpu.memory_space<vmem>>, vector<1x128xf32>
    %4 = vector.broadcast %3 : vector<1x128xf32> to vector<128x128xf32>
    %5 = arith.addf %2, %4 : vector<128x128xf32>
    %6 = math.tanh %5 : vector<128x128xf32>
    %7 = arith.truncf %6 : vector<128x128xf32> to vector<128x128xbf16>
    %c0_5 = arith.constant 0 : index
    %c0_6 = arith.constant 0 : index
    %8 = vector.load %arg4[%c0_5, %c0_6] : memref<128x256xbf16, #tpu.memory_space<vmem>>, vector<128x256xbf16>
    %cst_7 = arith.constant dense<0.000000e+00> : vector<128x256xf32>
    %9 = tpu.matmul %7, %8, %cst_7 {dimension_numbers = #tpu.dot_dimension_numbers<[1], [0], [0], [1], [0, 0, 1, 1], [], []>} : vector<128x128xbf16>, vector<128x256xbf16>, vector<128x256xf32> -> vector<128x256xf32>
    %c0_8 = arith.constant 0 : index
    %c0_9 = arith.constant 0 : index
    %10 = vector.load %arg5[%c0_8, %c0_9] : memref<1x256xf32, #tpu.memory_space<vmem>>, vector<1x256xf32>
    %11 = vector.broadcast %10 : vector<1x256xf32> to vector<128x256xf32>
    %12 = arith.addf %9, %11 : vector<128x256xf32>
    %13 = math.tanh %12 : vector<128x256xf32>
    %c0_10 = arith.constant 0 : index
    %c0_11 = arith.constant 0 : index
    %14 = vector.load %arg6[%c0_10, %c0_11] : memref<1x256xf32, #tpu.memory_space<vmem>>, vector<1x256xf32>
    %cst_12 = arith.constant dense<0.000000e+00> : vector<1x128xf32>
    %15 = tpu.matmul %14, %13, %cst_12 {dimension_numbers = #tpu.dot_dimension_numbers<[1], [1], [0], [0], [0, 0, 1, 0], [], []>} : vector<1x256xf32>, vector<128x256xf32>, vector<1x128xf32> -> vector<1x128xf32>
    %c0_13 = arith.constant 0 : index
    %c0_14 = arith.constant 0 : index
    %16 = memref.load %arg7[%c0_13, %c0_14] : memref<1x1xf32, #tpu.memory_space<smem>>
    %17 = vector.broadcast %16 : f32 to vector<1x128xf32>
    %18 = arith.addf %15, %17 : vector<1x128xf32>
    %19 = arith.negf %18 : vector<1x128xf32>
    %20 = math.exp %19 : vector<1x128xf32>
    %cst_15 = arith.constant 1.000000e+00 : f32
    %21 = vector.broadcast %cst_15 : f32 to vector<1x128xf32>
    %22 = arith.addf %21, %20 : vector<1x128xf32>
    %23 = arith.divf %21, %22 : vector<1x128xf32>
    %c0_16 = arith.constant 0 : index
    %c0_17 = arith.constant 0 : index
    %24 = vector.load %arg8[%c0_16, %c0_17] : memref<1x128xf32, #tpu.memory_space<vmem>>, vector<1x128xf32>
    tpu.vector_store %arg8[%c0_16, %c0_17], %23 {strides = array<i32>} : memref<1x128xf32, #tpu.memory_space<vmem>>, vector<1x128xf32>,
    return
  }
  func.func @transform_0(%arg0: i32) -> (i32, i32) {
    %c0_i32 = arith.constant 0 : i32
    %c0_i32_0 = arith.constant 0 : i32
    return %arg0, %c0_i32 : i32, i32
  }
  func.func @transform_1(%arg0: i32) -> (i32, i32) {
    %c0_i32 = arith.constant 0 : i32
    %c0_i32_0 = arith.constant 0 : i32
    %c0_i32_1 = arith.constant 0 : i32
    return %c0_i32, %c0_i32_0 : i32, i32
  }
  func.func @transform_2(%arg0: i32) -> (i32, i32) {
    %c0_i32 = arith.constant 0 : i32
    %c0_i32_0 = arith.constant 0 : i32
    %c0_i32_1 = arith.constant 0 : i32
    return %c0_i32, %c0_i32_0 : i32, i32
  }
  func.func @transform_3(%arg0: i32) -> (i32, i32) {
    %c0_i32 = arith.constant 0 : i32
    %c0_i32_0 = arith.constant 0 : i32
    %c0_i32_1 = arith.constant 0 : i32
    return %c0_i32, %c0_i32_0 : i32, i32
  }
  func.func @transform_4(%arg0: i32) -> (i32, i32) {
    %c0_i32 = arith.constant 0 : i32
    %c0_i32_0 = arith.constant 0 : i32
    %c0_i32_1 = arith.constant 0 : i32
    return %c0_i32, %c0_i32_0 : i32, i32
  }
  func.func @transform_5(%arg0: i32) -> (i32, i32) {
    %c0_i32 = arith.constant 0 : i32
    %c0_i32_0 = arith.constant 0 : i32
    %c0_i32_1 = arith.constant 0 : i32
    return %c0_i32, %c0_i32_0 : i32, i32
  }
  func.func @transform_6(%arg0: i32) -> (i32, i32) {
    %c0_i32 = arith.constant 0 : i32
    %c0_i32_0 = arith.constant 0 : i32
    %c0_i32_1 = arith.constant 0 : i32
    return %c0_i32, %c0_i32_0 : i32, i32
  }
  func.func @transform_7(%arg0: i32) -> (i32, i32) {
    %c0_i32 = arith.constant 0 : i32
    %c0_i32_0 = arith.constant 0 : i32
    return %c0_i32, %arg0 : i32, i32
  }
}

</mosaic_0001>

<bundles_post_ra>
// kernel: discriminator_forward.1
= control target key start
LH: loop header
LB: loop body
LE: loop exit
PB: predicated region body
PF: predicated region fallthrough
CT: control target
= control target key end

     0   :  { %vm96_vm0 = vcmask 130048   ;;  %s1028_s1 = inlined_call_operand.vmem [shape: bf16[16,128], index: 1, kind: input, shape index: {}]   ;;  %s1029_s0 = inlined_call_operand.vmem [shape: bf16[128,16], index: 0, kind: input, shape index: {}]   ;;  %s1030_s2 = inlined_call_operand.vmem [shape: f32[1,128], index: 2, kind: input, shape index: {}]   ;;  %s1031_s3 = inlined_call_operand.vmem [shape: bf16[128,256], index: 3, kind: input, shape index: {}]   ;;  %s1032_s4 = inlined_call_operand.vmem [shape: f32[1,256], index: 4, kind: input, shape index: {}]   ;;  %s1033_s5 = inlined_call_operand.vmem [shape: f32[1,256], index: 5, kind: input, shape index: {}]   ;;  %s1034_s6 = inlined_call_operand.<no memory space> [shape: f32[1,1], index: 6, kind: input, shape index: {}]   ;;  %s1035_s7 = inlined_call_operand.vmem [shape: f32[1,128], index: 7, kind: output, shape index: {}]  }
   0x1   :  { %v615_v0 = vld [vmem:[%s1028_s1] sm:$0xff]  ;;  %v608_v2 = vld [vmem:[%s1029_s0 + $0x8] sm:$0xff]  ;;  %v609_v3 = vld [vmem:[%s1029_s0 + $0x10] sm:$0xff] }
   0x2   :  { %v607_v1 = vld [vmem:[%s1029_s0] sm:$0xff]  ;;  %128 = vmatpush.bf16.msra.mxu0 %v615_v0  ;;  %v610_v4 = vld [vmem:[%s1029_s0 + $0x18] sm:$0xff]  ;;  %v612_v6 = vld [vmem:[%s1029_s0 + $0x28] sm:$0xff] }
   0x3   :  { %v611_v5 = vld [vmem:[%s1029_s0 + $0x20] sm:$0xff]  ;;  %v600_v7 = vld [vmem:[%s1031_s3 + $0x70] sm:$0xf]  ;;  %v631_v8 = vld [vmem:[%s1031_s3 + $0x74] sm:$0xf0] }
   0x4   :  { %v630_v9 = vld [vmem:[%s1031_s3 + $0x74] sm:$0xf]  ;;  %v601_v10 = vor.u32 %v631_v8, %v600_v7  ;;  %v602_v11 = vld [vmem:[%s1031_s3 + $0x78] sm:$0xf0]  ;;  %v592_v12 = vld [vmem:[%s1031_s3 + $0x60] sm:$0xf] }
   0x5   :  { %534 = vmatmul.msk.bf16.vlgmr.msra.gmra.mxu0 %vm96_vm0, %v607_v1  ;;  %v629_v13 = vld [vmem:[%s1031_s3 + $0x64] sm:$0xf0]  ;;  %v605_v14 = vor.u32 %v630_v9, %v602_v11  ;;  %v628_v15 = vld [vmem:[%s1031_s3 + $0x64] sm:$0xf]  ;;  %v594_v16 = vld [vmem:[%s1031_s3 + $0x68] sm:$0xf0] }
   0x6   :  { %296 = vmatpush.bf16.msra.mxu1 %v601_v10  ;;  %v593_v17 = vor.u32 %v629_v13, %v592_v12  ;;  %v597_v18 = vor.u32 %v628_v15, %v594_v16  ;;  %v584_v19 = vld [vmem:[%s1031_s3 + $0x50] sm:$0xf]  ;;  %v627_v20 = vld [vmem:[%s1031_s3 + $0x54] sm:$0xf0]  ;;  %v626_v21 = vld [vmem:[%s1031_s3 + $0x54] sm:$0xf] }
   0x7   :  { %345 = vmatpush.bf16.msra.mxu2 %v605_v14  ;;  %v586_v22 = vld [vmem:[%s1031_s3 + $0x58] sm:$0xf0]  ;;  %v585_v23 = vor.u32 %v627_v20, %v584_v19  ;;  %v576_v25 = vld [vmem:[%s1031_s3 + $0x40] sm:$0xf]  ;;  %v625_v26 = vld [vmem:[%s1031_s3 + $0x44] sm:$0xf0] }
   0x8   :  { %v589_v24 = vor.u32 %v626_v21, %v586_v22  ;;  %v624_v27 = vld [vmem:[%s1031_s3 + $0x44] sm:$0xf]  ;;  %v613_v28 = vld [vmem:[%s1029_s0 + $0x30] sm:$0xff]  ;;  %v577_v29 = vor.u32 %v625_v26, %v576_v25  ;;  %v578_v30 = vld [vmem:[%s1031_s3 + $0x48] sm:$0xf0] }
   0x9   :  { %v581_v31 = vor.u32 %v624_v27, %v578_v30  ;;  %v568_v32 = vld [vmem:[%s1031_s3 + $0x30] sm:$0xf]  ;;  %v623_v33 = vld [vmem:[%s1031_s3 + $0x34] sm:$0xf0]  ;;  %v622_v34 = vld [vmem:[%s1031_s3 + $0x34] sm:$0xf] }
   0xa   :  { %297 = vmatpush.bf16.msra.mxu1 %v593_v17  ;;  %v569_v35 = vor.u32 %v623_v33, %v568_v32  ;;  %v570_v36 = vld [vmem:[%s1031_s3 + $0x38] sm:$0xf0]  ;;  %v560_v38 = vld [vmem:[%s1031_s3 + $0x20] sm:$0xf]  ;;  %v621_v39 = vld [vmem:[%s1031_s3 + $0x24] sm:$0xf0] }
   0xb   :  { %346 = vmatpush.bf16.msra.mxu2 %v597_v18  ;;  %v573_v37 = vor.u32 %v622_v34, %v570_v36  ;;  %v620_v40 = vld [vmem:[%s1031_s3 + $0x24] sm:$0xf]  ;;  %v561_v41 = vor.u32 %v621_v39, %v560_v38  ;;  %v562_v42 = vld [vmem:[%s1031_s3 + $0x28] sm:$0xf0]  ;;  %v552_v44 = vld [vmem:[%s1031_s3 + $0x10] sm:$0xf] }
   0xc   :  { %v565_v43 = vor.u32 %v620_v40, %v562_v42  ;;  %v619_v45 = vld [vmem:[%s1031_s3 + $0x14] sm:$0xf0]  ;;  %v618_v46 = vld [vmem:[%s1031_s3 + $0x14] sm:$0xf]  ;;  %v554_v48 = vld [vmem:[%s1031_s3 + $0x18] sm:$0xf0] }
   0xd   :  { %v553_v47 = vor.u32 %v619_v45, %v552_v44  ;;  %v557_v49 = vor.u32 %v618_v46, %v554_v48  ;;  %v544_v50 = vld [vmem:[%s1031_s3] sm:$0xf]  ;;  %v617_v51 = vld [vmem:[%s1031_s3 + $0x4] sm:$0xf0]  ;;  %v616_v52 = vld [vmem:[%s1031_s3 + $0x4] sm:$0xf] }
   0xe   :  { %298 = vmatpush.bf16.msra.mxu1 %v585_v23  ;;  %v614_v53 = vld [vmem:[%s1029_s0 + $0x38] sm:$0xff]  ;;  %v545_v54 = vor.u32 %v617_v51, %v544_v50  ;;  %v546_v55 = vld [vmem:[%s1031_s3 + $0x8] sm:$0xf0]  ;;  %v907_v58 = vld [vmem:[%s1030_s2] ss:$0 sm:$0xff] }
   0xf   :  { %347 = vmatpush.bf16.msra.mxu2 %v589_v24  ;;  %v549_v56 = vor.u32 %v616_v52, %v546_v55 }
  0x12   :  { %299 = vmatpush.bf16.msra.mxu1 %v577_v29 }
  0x13   :  { %348 = vmatpush.bf16.msra.mxu2 %v581_v31 }
  0x15   :  { %535 = vmatmul.msk.bf16.gmra.mxu0 %vm96_vm0, %v608_v2 }
  0x16   :  { %300 = vmatpush.bf16.msra.mxu1 %v569_v35 }
  0x17   :  { %349 = vmatpush.bf16.msra.mxu2 %v573_v37 }
  0x1a   :  { %301 = vmatpush.bf16.msra.mxu1 %v561_v41 }
  0x1b   :  { %350 = vmatpush.bf16.msra.mxu2 %v565_v43 }
  0x1e   :  { %302 = vmatpush.bf16.msra.mxu1 %v553_v47 }
  0x1f   :  { %351 = vmatpush.bf16.msra.mxu2 %v557_v49 }
  0x22   :  { %303 = vmatpush.bf16.msra.mxu1 %v545_v54 }
  0x23   :  { %352 = vmatpush.bf16.msra.mxu2 %v549_v56 }
  0x25   :  { %536 = vmatmul.msk.bf16.gmra.mxu0 %vm96_vm0, %v609_v3 }
  0x35   :  { %537 = vmatmul.msk.bf16.gmra.mxu0 %vm96_vm0, %v610_v4 }
  0x45   :  { %538 = vmatmul.msk.bf16.gmra.mxu0 %vm96_vm0, %v611_v5 }
  0x55   :  { %539 = vmatmul.msk.bf16.gmra.mxu0 %vm96_vm0, %v612_v6 }
  0x65   :  { %540 = vmatmul.msk.bf16.gmra.mxu0 %vm96_vm0, %v613_v28 }
  0x75   :  { %541 = vmatmul.msk.bf16.gmra.mxu0 %vm96_vm0, %v614_v53 }
  0x82   :  { %v130_v57 = vpop.f32.mrf.mxu0 }
  0x83   :  { %v131_v59 = vadd.f32 %v907_v58, %v130_v57 }
  0x85   :  { %633 = vtanh.f32 %v131_v59 }
  0x8a   :  { %v132_v60 = vpop.f32.mrf.mxu0 }
  0x8b   :  { %v133_v61 = vadd.f32 %v907_v58, %v132_v60  ;;  %v634_v62 = vpop.eup %633 }
  0x8d   :  { %635 = vtanh.f32 %v133_v61 }
  0x92   :  { %v135_v63 = vpop.f32.mrf.mxu0 }
  0x93   :  { %v636_v0 = vpop.eup %635  ;;  %v136_v2 = vadd.f32 %v907_v58, %v135_v63 }
  0x94   :  { %v186_v1 = vpack.c.bf16 %v636_v0, %v634_v62 }
  0x95   :  { %637 = vtanh.f32 %v136_v2 }
  0x96   :  { %304 = vmatmul.bf16.vlgmr.msra.gmra.mxu1 %v186_v1  ;;  %353 = vmatmul.bf16.vlgmr.msra.gmra.mxu2 %v186_v1 }
  0x9a   :  { %v137_v3 = vpop.f32.mrf.mxu0 }
  0x9b   :  { %v138_v4 = vadd.f32 %v907_v58, %v137_v3  ;;  %v638_v5 = vpop.eup %637 }
  0x9d   :  { %639 = vtanh.f32 %v138_v4 }
  0xa2   :  { %v140_v6 = vpop.f32.mrf.mxu0 }
  0xa3   :  { %v640_v7 = vpop.eup %639  ;;  %v141_v9 = vadd.f32 %v907_v58, %v140_v6 }
  0xa4   :  { %v187_v8 = vpack.c.bf16 %v640_v7, %v638_v5 }
  0xa5   :  { %641 = vtanh.f32 %v141_v9 }
  0xa6   :  { %309 = vmatmul.bf16.gmra.mxu1 %v187_v8  ;;  %358 = vmatmul.bf16.gmra.mxu2 %v187_v8 }
  0xaa   :  { %v142_v10 = vpop.f32.mrf.mxu0 }
  0xab   :  { %v143_v11 = vadd.f32 %v907_v58, %v142_v10  ;;  %v642_v12 = vpop.eup %641  ;;  %v956_v10 = vld [vmem:[%s1032_s4] sm:$0x3] }
  0xad   :  { %643 = vtanh.f32 %v143_v11 }
  0xb2   :  { %v145_v13 = vpop.f32.mrf.mxu0 }
  0xb3   :  { %v644_v14 = vpop.eup %643  ;;  %v146_v16 = vadd.f32 %v907_v58, %v145_v13 }
  0xb4   :  { %v188_v15 = vpack.c.bf16 %v644_v14, %v642_v12  ;;  %v961_v12 = vperm.slane %v956_v10, 0 }
  0xb5   :  { %645 = vtanh.f32 %v146_v16 }
  0xb6   :  { %314 = vmatmul.bf16.gmra.mxu1 %v188_v15  ;;  %363 = vmatmul.bf16.gmra.mxu2 %v188_v15 }
  0xba   :  { %v147_v17 = vpop.f32.mrf.mxu0 }
  0xbb   :  { %v148_v18 = vadd.f32 %v907_v58, %v147_v17  ;;  %v646_v19 = vpop.eup %645 }
  0xbd   :  { %647 = vtanh.f32 %v148_v18 }
  0xc2   :  { %v150_v20 = vpop.f32.mrf.mxu0 }
  0xc3   :  { %v648_v21 = vpop.eup %647  ;;  %v151_v23 = vadd.f32 %v907_v58, %v150_v20 }
  0xc4   :  { %v189_v22 = vpack.c.bf16 %v648_v21, %v646_v19 }
  0xc5   :  { %649 = vtanh.f32 %v151_v23 }
  0xc6   :  { %319 = vmatmul.bf16.gmra.mxu1 %v189_v22  ;;  %368 = vmatmul.bf16.gmra.mxu2 %v189_v22 }
  0xca   :  { %v152_v24 = vpop.f32.mrf.mxu0 }
  0xcb   :  { %v153_v25 = vadd.f32 %v907_v58, %v152_v24  ;;  %v650_v26 = vpop.eup %649 }
  0xcd   :  { %651 = vtanh.f32 %v153_v25 }
  0xd2   :  { %v155_v27 = vpop.f32.mrf.mxu0 }
  0xd3   :  { %v652_v28 = vpop.eup %651  ;;  %v156_v30 = vadd.f32 %v907_v58, %v155_v27 }
  0xd4   :  { %v190_v29 = vpack.c.bf16 %v652_v28, %v650_v26 }
  0xd5   :  { %653 = vtanh.f32 %v156_v30 }
  0xd6   :  { %324 = vmatmul.bf16.gmra.mxu1 %v190_v29  ;;  %373 = vmatmul.bf16.gmra.mxu2 %v190_v29 }
  0xda   :  { %v157_v31 = vpop.f32.mrf.mxu0 }
  0xdb   :  { %v158_v32 = vadd.f32 %v907_v58, %v157_v31  ;;  %v654_v33 = vpop.eup %653 }
  0xdd   :  { %655 = vtanh.f32 %v158_v32 }
  0xe2   :  { %v160_v34 = vpop.f32.mrf.mxu0 }
  0xe3   :  { %v656_v35 = vpop.eup %655  ;;  %v161_v37 = vadd.f32 %v907_v58, %v160_v34 }
  0xe4   :  { %v191_v36 = vpack.c.bf16 %v656_v35, %v654_v33 }
  0xe5   :  { %657 = vtanh.f32 %v161_v37 }
  0xe6   :  { %329 = vmatmul.bf16.gmra.mxu1 %v191_v36  ;;  %378 = vmatmul.bf16.gmra.mxu2 %v191_v36 }
  0xea   :  { %v162_v38 = vpop.f32.mrf.mxu0 }
  0xeb   :  { %v163_v39 = vadd.f32 %v907_v58, %v162_v38  ;;  %v658_v40 = vpop.eup %657 }
  0xed   :  { %659 = vtanh.f32 %v163_v39 }
  0xf2   :  { %v165_v41 = vpop.f32.mrf.mxu0 }
  0xf3   :  { %v660_v42 = vpop.eup %659  ;;  %v166_v44 = vadd.f32 %v907_v58, %v165_v41 }
  0xf4   :  { %v192_v43 = vpack.c.bf16 %v660_v42, %v658_v40 }
  0xf5   :  { %661 = vtanh.f32 %v166_v44 }
  0xf6   :  { %334 = vmatmul.bf16.gmra.mxu1 %v192_v43  ;;  %383 = vmatmul.bf16.gmra.mxu2 %v192_v43 }
  0xfa   :  { %v167_v45 = vpop.f32.mrf.mxu0 }
  0xfb   :  { %v168_v46 = vadd.f32 %v907_v58, %v167_v45  ;;  %v662_v47 = vpop.eup %661 }
  0xfd   :  { %663 = vtanh.f32 %v168_v46 }
 0x103   :  { %v664_v48 = vpop.eup %663 }
 0x104   :  { %v193_v49 = vpack.c.bf16 %v664_v48, %v662_v47  ;;  %v987_v48 = vperm.slane %v956_v10, 1 }
 0x106   :  { %339 = vmatmul.bf16.gmra.mxu1 %v193_v49  ;;  %388 = vmatmul.bf16.gmra.mxu2 %v193_v49 }
 0x113   :  { %v925_v50 = vpop.f32.mrf.mxu1 }
 0x114   :  { %v306_v49 = vadd.f32 %v925_v50, %v961_v12 }
 0x119   :  { %v933_v54 = vpop.f32.mrf.mxu2 }
 0x11b   :  { %v927_v51 = vpop.f32.mrf.mxu1 }
 0x11c   :  { %v308_v45 = vadd.f32 %v927_v51, %v961_v12 }
 0x121   :  { %v937_v56 = vpop.f32.mrf.mxu2 }
 0x123   :  { %v929_v52 = vpop.f32.mrf.mxu1 }
 0x124   :  { %v311_v43 = vadd.f32 %v929_v52, %v961_v12 }
 0x129   :  { %v939_v58 = vpop.f32.mrf.mxu2 }
 0x12b   :  { %v931_v53 = vpop.f32.mrf.mxu1 }
 0x12c   :  { %v313_v40 = vadd.f32 %v931_v53, %v961_v12 }
 0x131   :  { %v941_v61 = vpop.f32.mrf.mxu2 }
 0x133   :  { %v935_v55 = vpop.f32.mrf.mxu1 }
 0x134   :  { %v316_v38 = vadd.f32 %v935_v55, %v961_v12 }
 0x139   :  { %v943_v63 = vpop.f32.mrf.mxu2 }
 0x13b   :  { %v317_v57 = vpop.f32.mrf.mxu1 }
 0x13c   :  { %v318_v36 = vadd.f32 %v317_v57, %v961_v12 }
 0x141   :  { %v945_v1 = vpop.f32.mrf.mxu2 }
 0x143   :  { %v320_v59 = vpop.f32.mrf.mxu1 }
 0x144   :  { %v321_v33 = vadd.f32 %v320_v59, %v961_v12 }
 0x149   :  { %v947_v3 = vpop.f32.mrf.mxu2 }
 0x14b   :  { %v322_v60 = vpop.f32.mrf.mxu1 }
 0x14c   :  { %v323_v31 = vadd.f32 %v322_v60, %v961_v12 }
 0x151   :  { %v949_v6 = vpop.f32.mrf.mxu2 }
 0x153   :  { %v325_v62 = vpop.f32.mrf.mxu1 }
 0x154   :  { %v326_v28 = vadd.f32 %v325_v62, %v961_v12 }
 0x159   :  { %v951_v8 = vpop.f32.mrf.mxu2 }
 0x15a   :  { %v375_v10 = vadd.f32 %v951_v8, %v987_v48 }
 0x15b   :  { %v327_v0 = vpop.f32.mrf.mxu1 }
 0x15c   :  { %v328_v26 = vadd.f32 %v327_v0, %v961_v12 }
 0x161   :  { %v958_v11 = vpop.f32.mrf.mxu2 }
 0x163   :  { %v330_v2 = vpop.f32.mrf.mxu1 }
 0x164   :  { %v331_v24 = vadd.f32 %v330_v2, %v961_v12 }
 0x169   :  { %v965_v16 = vpop.f32.mrf.mxu2 }
 0x16b   :  { %v332_v4 = vpop.f32.mrf.mxu1 }
 0x16c   :  { %v333_v21 = vadd.f32 %v332_v4, %v961_v12  ;;  %v380_v4 = vadd.f32 %v965_v16, %v987_v48 }
 0x171   :  { %v970_v23 = vpop.f32.mrf.mxu2 }
 0x172   :  { %v382_v0 = vadd.f32 %v970_v23, %v987_v48  ;;  %v355_v23 = vadd.f32 %v933_v54, %v987_v48 }
 0x173   :  { %v335_v5 = vpop.f32.mrf.mxu1 }
 0x174   :  { %v336_v19 = vadd.f32 %v335_v5, %v961_v12 }
 0x179   :  { %v384_v29 = vpop.f32.mrf.mxu2 }
 0x17a   :  { %v385_v50 = vadd.f32 %v384_v29, %v987_v48 }
 0x17b   :  { %v337_v7 = vpop.f32.mrf.mxu1 }
 0x17c   :  { %v338_v17 = vadd.f32 %v337_v7, %v961_v12  ;;  %v377_v7 = vadd.f32 %v958_v11, %v987_v48  ;;  %v370_v11 = vadd.f32 %v947_v3, %v987_v48 }
 0x181   :  { %v386_v35 = vpop.f32.mrf.mxu2 }
 0x182   :  { %v387_v57 = vadd.f32 %v386_v35, %v987_v48 }
 0x183   :  { %v340_v9 = vpop.f32.mrf.mxu1 }
 0x184   :  { %v341_v15 = vadd.f32 %v340_v9, %v961_v12 }
 0x189   :  { %v389_v41 = vpop.f32.mrf.mxu2 }
 0x18a   :  { %v390_v55 = vadd.f32 %v389_v41, %v987_v48 }
 0x18b   :  { %v342_v13 = vpop.f32.mrf.mxu1 }
 0x18c   :  { %v343_v14 = vadd.f32 %v342_v13, %v961_v12  ;;  %v426_v13 = vld [vmem:[%s1033_s5] sm:$0x3] }
 0x18e   :  { %665 = vtanh.f32 %v343_v14  ;;  %v372_v14 = vadd.f32 %v949_v6, %v987_v48  ;;  %v365_v6 = vadd.f32 %v943_v63, %v987_v48 }
 0x18f   :  { %667 = vtanh.f32 %v341_v15  ;;  %v430_v15 = vperm.slane %v426_v13, 0 }
 0x190   :  { %669 = vtanh.f32 %v338_v17  ;;  %v367_v17 = vadd.f32 %v945_v1, %v987_v48 }
 0x191   :  { %671 = vtanh.f32 %v336_v19  ;;  %v391_v47 = vpop.f32.mrf.mxu2 }
 0x192   :  { %673 = vtanh.f32 %v333_v21  ;;  %v392_v53 = vadd.f32 %v391_v47, %v987_v48  ;;  %v360_v21 = vadd.f32 %v939_v58, %v987_v48  ;;  %v431_v58 = vperm.slane %v426_v13, 1 }
 0x193   :  { %675 = vtanh.f32 %v331_v24 }
 0x194   :  { %v666_v18 = vpop.eup %665  ;;  %677 = vtanh.f32 %v328_v26 }
 0x195   :  { %434 = vmatpush.xpose.msra.mxu3 %v666_v18  ;;  %v668_v20 = vpop.eup %667  ;;  %679 = vtanh.f32 %v326_v28 }
 0x196   :  { %v670_v22 = vpop.eup %669  ;;  %681 = vtanh.f32 %v323_v31 }
 0x197   :  { %v672_v25 = vpop.eup %671  ;;  %683 = vtanh.f32 %v321_v33 }
 0x198   :  { %v674_v27 = vpop.eup %673  ;;  %685 = vtanh.f32 %v318_v36 }
 0x199   :  { %435 = vmatpush.xpose.msra.mxu3 %v668_v20  ;;  %v676_v30 = vpop.eup %675  ;;  %687 = vtanh.f32 %v316_v38  ;;  %v362_v20 = vadd.f32 %v941_v61, %v987_v48 }
 0x19a   :  { %v678_v32 = vpop.eup %677  ;;  %689 = vtanh.f32 %v313_v40 }
 0x19b   :  { %v680_v34 = vpop.eup %679  ;;  %691 = vtanh.f32 %v311_v43 }
 0x19c   :  { %v682_v37 = vpop.eup %681  ;;  %693 = vtanh.f32 %v308_v45 }
 0x19d   :  { %436 = vmatpush.xpose.msra.mxu3 %v670_v22  ;;  %v684_v39 = vpop.eup %683  ;;  %695 = vtanh.f32 %v306_v49  ;;  %v357_v22 = vadd.f32 %v937_v56, %v987_v48  ;;  %v428_v56 = vstv %s1034_s6 }
 0x19e   :  { %v686_v42 = vpop.eup %685  ;;  %697 = vtanh.f32 %v392_v53 }
 0x19f   :  { %v688_v44 = vpop.eup %687  ;;  %699 = vtanh.f32 %v390_v55 }
 0x1a0   :  { %v690_v46 = vpop.eup %689  ;;  %701 = vtanh.f32 %v387_v57 }
 0x1a1   :  { %437 = vmatpush.xpose.msra.mxu3 %v672_v25  ;;  %v692_v52 = vpop.eup %691  ;;  %703 = vtanh.f32 %v385_v50 }
 0x1a2   :  { %v694_v51 = vpop.eup %693  ;;  %705 = vtanh.f32 %v382_v0 }
 0x1a3   :  { %v696_v59 = vpop.eup %695  ;;  %707 = vtanh.f32 %v380_v4 }
 0x1a4   :  { %v698_v60 = vpop.eup %697  ;;  %709 = vtanh.f32 %v377_v7 }
 0x1a5   :  { %438 = vmatpush.xpose.msra.mxu3 %v674_v27  ;;  %v700_v62 = vpop.eup %699  ;;  %711 = vtanh.f32 %v375_v10 }
 0x1a6   :  { %v702_v2 = vpop.eup %701  ;;  %713 = vtanh.f32 %v372_v14 }
 0x1a7   :  { %v704_v5 = vpop.eup %703  ;;  %715 = vtanh.f32 %v370_v11 }
 0x1a8   :  { %v706_v9 = vpop.eup %705  ;;  %717 = vtanh.f32 %v367_v17 }
 0x1a9   :  { %439 = vmatpush.xpose.msra.mxu3 %v676_v30  ;;  %v708_v12 = vpop.eup %707  ;;  %719 = vtanh.f32 %v365_v6 }
 0x1aa   :  { %v710_v16 = vpop.eup %709  ;;  %721 = vtanh.f32 %v362_v20 }
 0x1ab   :  { %v712_v8 = vpop.eup %711  ;;  %723 = vtanh.f32 %v360_v21 }
 0x1ac   :  { %v714_v18 = vpop.eup %713  ;;  %725 = vtanh.f32 %v357_v22 }
 0x1ad   :  { %440 = vmatpush.xpose.msra.mxu3 %v678_v32  ;;  %v716_v19 = vpop.eup %715  ;;  %727 = vtanh.f32 %v355_v23 }
 0x1ae   :  { %v718_v3 = vpop.eup %717 }
 0x1af   :  { %v720_v1 = vpop.eup %719 }
 0x1b0   :  { %v722_v63 = vpop.eup %721 }
 0x1b1   :  { %441 = vmatpush.xpose.msra.mxu3 %v680_v34  ;;  %v724_v61 = vpop.eup %723 }
 0x1b2   :  { %v726_v24 = vpop.eup %725 }
 0x1b3   :  { %v728_v25 = vpop.eup %727 }
 0x1b5   :  { %442 = vmatpush.xpose.msra.mxu3 %v682_v37 }
 0x1b9   :  { %443 = vmatpush.xpose.msra.mxu3 %v684_v39 }
 0x1bd   :  { %444 = vmatpush.xpose.msra.mxu3 %v686_v42 }
 0x1c1   :  { %445 = vmatpush.xpose.msra.mxu3 %v688_v44 }
 0x1c5   :  { %446 = vmatpush.xpose.msra.mxu3 %v690_v46 }
 0x1c9   :  { %447 = vmatpush.xpose.msra.mxu3 %v692_v52 }
 0x1cd   :  { %448 = vmatpush.xpose.msra.mxu3 %v694_v51 }
 0x1d1   :  { %449 = vmatpush.xpose.msra.mxu3 %v696_v59 }
 0x1d4   :  { %450 = vmatmul.f32.vlgmr.msra.gmra.mxu3 %v430_v15 }
 0x1d5   :  { %454 = vmatpush.xpose.msrb.mxu3 %v698_v60 }
 0x1d9   :  { %455 = vmatpush.xpose.msrb.mxu3 %v700_v62 }
 0x1dd   :  { %456 = vmatpush.xpose.msrb.mxu3 %v702_v2 }
 0x1e1   :  { %457 = vmatpush.xpose.msrb.mxu3 %v704_v5 }
 0x1e5   :  { %458 = vmatpush.xpose.msrb.mxu3 %v706_v9 }
 0x1e9   :  { %459 = vmatpush.xpose.msrb.mxu3 %v708_v12 }
 0x1ed   :  { %460 = vmatpush.xpose.msrb.mxu3 %v710_v16 }
 0x1f1   :  { %461 = vmatpush.xpose.msrb.mxu3 %v712_v8 }
 0x1f5   :  { %462 = vmatpush.xpose.msrb.mxu3 %v714_v18 }
 0x1f9   :  { %463 = vmatpush.xpose.msrb.mxu3 %v716_v19 }
 0x1fd   :  { %464 = vmatpush.xpose.msrb.mxu3 %v718_v3 }
 0x201   :  { %465 = vmatpush.xpose.msrb.mxu3 %v720_v1 }
 0x205   :  { %466 = vmatpush.xpose.msrb.mxu3 %v722_v63 }
 0x209   :  { %467 = vmatpush.xpose.msrb.mxu3 %v724_v61 }
 0x20d   :  { %468 = vmatpush.xpose.msrb.mxu3 %v726_v24 }
 0x211   :  { %469 = vmatpush.xpose.msrb.mxu3 %v728_v25 }
 0x214   :  { %470 = vmatmul.f32.vlgmr.msrb.gmra.mxu3 %v431_v58 }
 0x257   :  { %v451_v26 = vpop.f32.mrf.mxu3 }
 0x258   :  { %v452_v27 = vadd.f32 %v451_v26, %v428_v56 }
 0x297   :  { %v471_v28 = vpop.f32.mrf.mxu3 }
 0x298   :  { %v472_v29 = vadd.f32 %v471_v28, %v452_v27 }
 0x29a   :  { %v606_v30 = vmul.f32 -1.442695, %v472_v29 }
 0x29c   :  { %729 = vpow2.f32 %v606_v30 }
 0x2a2   :  { %v730_v54 = vpop.eup %729 }
 0x2a3   :  { %v477_v31 = vadd.f32 1.0, %v730_v54 }
 0x2a5   :  { %731 = vrcp.f32 %v477_v31  ;;  %v489_v35 = vand.u32 2147483648, %v477_v31  ;;  %v487_v37 = vand.u32 2147483647, %v477_v31  ;;  %vm483_vm2 = vweird.f32 %v477_v31 }
 0x2a7   :  { %v490_v39 = vor.u32 1.1754944e-38, %v489_v35  ;;  %vm488_vm4 = vcmp.eq.f32.partialorder %v487_v37, 8.507059e+37 }
 0x2ab   :  { %v732_v32 = vpop.eup %731 }
 0x2ac   :  { %v479_v33 = vmul.f32 %v732_v32, %v477_v31  ;;  %vm484_vm1 = vweird.f32 %v732_v32 }
 0x2ad   :  { %vm485_vm3 = vmor %vm483_vm2, %vm484_vm1 }
 0x2ae   :  { %v480_v34 = vsub.f32 1.0, %v479_v33 }
 0x2b0   :  { %v481_v36 = vmul.f32 %v732_v32, %v480_v34 }
 0x2b2   :  { %v482_v38 = vadd.f32 %v732_v32, %v481_v36 }
 0x2b4   :  { %v486_v40 = vsel %vm485_vm3, %v732_v32, %v482_v38 }
 0x2b5   :  { %v491_v41 = vsel %vm488_vm4, %v490_v39, %v486_v40 }
 0x2b6   :  { %493 = vst [vmem:[%s1035_s7] sm:$0x1] %v491_v41 }

</bundles_post_ra>
